<compile_context>
chip_gen: v6e
topology: v6e:2x2x1
jax: 0.10.0
libtpu: 0.0.40
codegen_flags: <defaults>
</compile_context>

<pallas_src>
import functools

import jax
import jax.numpy as jnp
from jax.experimental import pallas as pl
from jax.experimental.pallas import tpu as pltpu


# ---------------------------------------------------------------------------
# Kernel
# ---------------------------------------------------------------------------
def _decoder_init_kernel(enc_ref, w_ref, b_ref, out_ref, acc_ref, *, inv_len):
    # enc_ref: (bB, bL, E_eff)   w_ref: (E_eff, P)   b_ref: (1, P)
    # out_ref: (bB, P)           acc_ref: (bB, E_eff) f32 scratch (sum over L)
    l = pl.program_id(1)

    @pl.when(l == 0)
    def _():
        acc_ref[...] = jnp.zeros_like(acc_ref)

    # Partial sum over this L block; accumulate in f32 (load stays in the
    # input dtype so the HBM-bound DMA is as small as possible).
    acc_ref[...] += jnp.sum(enc_ref[...].astype(jnp.float32), axis=1)

    @pl.when(l == pl.num_programs(1) - 1)
    def _():
        mean = acc_ref[...] * inv_len                          # (bB, E_eff)
        y = jnp.dot(mean, w_ref[...],
                    preferred_element_type=jnp.float32) + b_ref[...]
        out_ref[...] = jnp.tanh(y).astype(out_ref.dtype)


# ---------------------------------------------------------------------------
# Small helpers (host-side, outside the hot path)
# ---------------------------------------------------------------------------
def _round_up(x, m):
    return ((x + m - 1) // m) * m


def _sublane_align(dtype):
    # Native sublane tiling: f32 -> 8, bf16 -> 16, int8/fp8 -> 32.
    return max(8, 32 // jnp.dtype(dtype).itemsize)


def _vmem_capacity_bytes():
    try:
        info = pltpu.get_tpu_info()
        cap = int(getattr(info, "vmem_capacity_bytes", 0) or 0)
        if cap > 0:
            return cap
    except Exception:
        pass
    return 64 * 1024 * 1024          # conservative default (v7x per-TC VMEM)


def _pick_batch_tile(B, max_tile=128):
    """Largest multiple-of-8 divisor of B (<= max_tile), preferring one that
    leaves >= 2 grid steps on the parallel B axis (v7x's second TensorCore).
    Falls back to bB == B (always a legal block extent)."""
    cands = [t for t in range(8, min(B, max_tile) + 1, 8) if B % t == 0]
    if not cands:
        return B
    two_step = [t for t in cands if B // t >= 2]
    return max(two_step) if two_step else max(cands)


# ---------------------------------------------------------------------------
# One-time parameter packing (NOT in the per-call hot path)
# ---------------------------------------------------------------------------
def pack_params(params):
    """Fuse the three PyTorch Linears ((H, E) each) into a single (E, 3H)
    weight and (1, 3H) bias, padded to a multiple of 128 lanes so the single
    output store is unmasked.  When E < 128 and divides 128, the weight is
    additionally tiled g = 128 // E times along its input dim so the kernel
    can consume a lane-regrouped (B, L/g, g*E) encoder tensor with no
    in-kernel cross-lane fold."""
    H, E = params["wh"].shape
    w_all = jnp.concatenate(
        [params["wh"].T, params["wc"].T, params["wo"].T], axis=1)   # (E, 3H)
    b_all = jnp.concatenate(
        [params["bh"], params["bc"], params["bo"]]).reshape(1, 3 * H)
    P = _round_up(3 * H, 128)
    if P != 3 * H:
        w_all = jnp.pad(w_all, ((0, 0), (0, P - 3 * H)))
        b_all = jnp.pad(b_all, ((0, 0), (0, P - 3 * H)))

    g = 128 // E if (E < 128 and 128 % E == 0) else 1
    if g > 1:
        w_all = jnp.concatenate([w_all] * g, axis=0)                # (g*E, P)
    return w_all, b_all, H, g


# ---------------------------------------------------------------------------
# Wrapper
# ---------------------------------------------------------------------------
def decoder_init_states(encoder_output, w_all, b_all, H, g):
    """encoder_output: (B, L, E).  Returns (h, c, o), each (B, H) float32."""
    B, L, E = encoder_output.shape
    E_eff = g * E                            # lane-regrouped feature dim
    P = w_all.shape[1]
    assert w_all.shape[0] == E_eff, "packed weight does not match encoder dim"
    itemsize = jnp.dtype(encoder_output.dtype).itemsize

    # ---- batch tile (parallel grid axis) ----------------------------------
    bB = _pick_batch_tile(B)

    # ---- L tile: generation-aware per-buffer VMEM budget -------------------
    vmem_cap = _vmem_capacity_bytes()
    enc_buf_budget = (12 << 20) if vmem_cap >= (100 << 20) else (6 << 20)
    align = _sublane_align(encoder_output.dtype)
    row_bytes = bB * E_eff * itemsize
    cap_rows = max(align, ((enc_buf_budget // row_bytes) // align) * align)

    L_grp = -(-L // g)                       # groups after lane regrouping
    if L_grp <= cap_rows:
        bL, n_l = L_grp, 1                   # single block: full-dim extent OK
    else:
        bL = cap_rows                        # multiple of `align` (>= 8)
        n_l = -(-L_grp // bL)

    # ---- pad L so the tiling always fits the budget (zeros are harmless:
    #      they add nothing to the sum; inv_len uses the true L) ------------
    L_total = n_l * bL * g
    enc = encoder_output
    if L_total != L:
        enc = jnp.pad(enc, ((0, 0), (0, L_total - L), (0, 0)))
    if g > 1:
        enc = enc.reshape(B, n_l * bL, E_eff)      # contiguous -> lane-dense

    grid = (B // bB, n_l)

    # ---- explicit VMEM limit from the actual buffers (conservative: counts
    #      the constant weight/bias double-buffered so the fallback path is
    #      covered too) ------------------------------------------------------
    needed = (2 * bB * bL * E_eff * itemsize       # enc blocks (double-buffered)
              + 2 * (w_all.size * 4 + P * 4)       # weight + bias
              + 2 * bB * P * 4                     # output (double-buffered)
              + bB * E_eff * 4)                    # f32 accumulator scratch
    vmem_limit = max(16 << 20,
                     min(int(needed * 1.25) + (2 << 20),
                         int(vmem_cap * 0.75)))

    def run(single_buffer_consts):
        const_kw = ({"pipeline_mode": pl.Buffered(1)}
                    if single_buffer_consts else {})
        return pl.pallas_call(
            functools.partial(_decoder_init_kernel, inv_len=1.0 / L),
            out_shape=jax.ShapeDtypeStruct((B, P), jnp.float32),
            grid_spec=pltpu.PrefetchScalarGridSpec(
                num_scalar_prefetch=0,
                grid=grid,
                in_specs=[
                    pl.BlockSpec((bB, bL, E_eff), lambda b, l: (b, l, 0)),
                    pl.BlockSpec((E_eff, P), lambda b, l: (0, 0), **const_kw),
                    pl.BlockSpec((1, P), lambda b, l: (0, 0), **const_kw),
                ],
                out_specs=pl.BlockSpec((bB, P), lambda b, l: (b, 0)),
                scratch_shapes=[pltpu.VMEM((bB, E_eff), jnp.float32)],
            ),
            compiler_params=pltpu.CompilerParams(
                dimension_semantics=("parallel", "arbitrary"),
                vmem_limit_bytes=vmem_limit),
        )(enc, w_all, b_all)

    try:
        out = run(True)       # single-buffer the constant weight / bias
    except Exception:         # fallback if this build rejects Buffered(1)
        out = run(False)

    h = out[:, 0 * H:1 * H]
    c = out[:, 1 * H:2 * H]
    o = out[:, 2 * H:3 * H]
    return h, c, o


# ---------------------------------------------------------------------------
# Synthetic parameters + pure-JAX reference
# ---------------------------------------------------------------------------
def make_params(key, encoder_outdim, decoder_rnn_hidden):
    """Deterministic synthetic parameters (PyTorch Linear shapes: W=(out,in))."""
    ks = jax.random.split(key, 6)
    scale = 1.0 / jnp.sqrt(jnp.float32(encoder_outdim))

    def u(k, shape):
        return jax.random.uniform(k, shape, jnp.float32, -scale, scale)

    return {
        "wh": u(ks[0], (decoder_rnn_hidden, encoder_outdim)),
        "bh": u(ks[1], (decoder_rnn_hidden,)),
        "wc": u(ks[2], (decoder_rnn_hidden, encoder_outdim)),
        "bc": u(ks[3], (decoder_rnn_hidden,)),
        "wo": u(ks[4], (decoder_rnn_hidden, encoder_outdim)),
        "bo": u(ks[5], (decoder_rnn_hidden,)),
    }


def reference(encoder_output, params):
    mean = jnp.mean(encoder_output, axis=1)
    h = jnp.tanh(mean @ params["wh"].T + params["bh"])
    c = jnp.tanh(mean @ params["wc"].T + params["bc"])
    o = jnp.tanh(mean @ params["wo"].T + params["bo"])
    return h, c, o


if __name__ == "__main__":
    B, L = 2, 8                     # batch, encoder sequence length
    encoder_outdim = 32
    decoder_rnn_hidden = 32
    # embed_size / output_size exist in __init__ but are unused by forward().
    # TODO(synk): LSTMCell / Embedding from __init__ are never used by forward().

    key = jax.random.PRNGKey(0)
    k_enc, k_par = jax.random.split(key)
    encoder_output = jax.random.normal(
        k_enc, (B, L, encoder_outdim), jnp.float32)
    params = make_params(k_par, encoder_outdim, decoder_rnn_hidden)

    # Pack / pad / lane-tile the weights once, outside the per-call path.
    w_all, b_all, H, g = pack_params(params)

    h, c, o = decoder_init_states(encoder_output, w_all, b_all, H, g)
    jax.block_until_ready((h, c, o))

    h_ref, c_ref, o_ref = reference(encoder_output, params)
    assert jnp.allclose(h, h_ref, atol=1e-5, rtol=1e-5)
    assert jnp.allclose(c, c_ref, atol=1e-5, rtol=1e-5)
    assert jnp.allclose(o, o_ref, atol=1e-5, rtol=1e-5)

    print("KERNEL_OK")
</pallas_src>

<mosaic_0001>
module attributes {stable_mosaic.version = 11 : i64} {
  func.func @_decoder_init_kernel(%arg0: i32, %arg1: i32, %arg2: memref<2x2x128xf32, #tpu.memory_space<vmem>>, %arg3: memref<128x128xf32, #tpu.memory_space<vmem>>, %arg4: memref<1x128xf32, #tpu.memory_space<vmem>>, %arg5: memref<2x128xf32, #tpu.memory_space<vmem>>, %arg6: memref<2x128xf32, #tpu.memory_space<vmem>>) attributes {dimension_semantics = [#tpu.dimension_semantics<parallel>, #tpu.dimension_semantics<arbitrary>], iteration_bounds = array<i64: 1, 1>, scalar_prefetch = 0 : i64, scratch_operands = 1 : i64, tpu.core_type = #tpu.core_type<tc>, window_params = [{transform_indices = @transform_0, window_bounds = array<i64: 2, 2, 128>}, {pipeline_mode = #tpu.pipeline_mode<synchronous>, transform_indices = @transform_1, window_bounds = array<i64: 128, 128>}, {pipeline_mode = #tpu.pipeline_mode<synchronous>, transform_indices = @transform_2, window_bounds = array<i64: 1, 128>}, {transform_indices = @transform_3, window_bounds = array<i64: 2, 128>}]} {
    %c0_i32 = arith.constant 0 : i32
    %0 = arith.cmpi eq, %arg1, %c0_i32 : i32
    %1 = arith.extui %0 : i1 to i32
    %c0_i32_0 = arith.constant 0 : i32
    %2 = arith.cmpi ne, %1, %c0_i32_0 : i32
    scf.if %2 {
      %cst_9 = arith.constant 0.000000e+00 : f32
      %11 = vector.broadcast %cst_9 : f32 to vector<2x128xf32>
      %c0_10 = arith.constant 0 : index
      %c0_11 = arith.constant 0 : index
      %12 = vector.load %arg6[%c0_10, %c0_11] : memref<2x128xf32, #tpu.memory_space<vmem>>, vector<2x128xf32>
      tpu.vector_store %arg6[%c0_10, %c0_11], %11 {strides = array<i32>} : memref<2x128xf32, #tpu.memory_space<vmem>>, vector<2x128xf32>,
    } else {
    }
    %c0 = arith.constant 0 : index
    %c0_1 = arith.constant 0 : index
    %3 = vector.load %arg6[%c0, %c0_1] : memref<2x128xf32, #tpu.memory_space<vmem>>, vector<2x128xf32>
    %c0_2 = arith.constant 0 : index
    %c0_3 = arith.constant 0 : index
    %c0_4 = arith.constant 0 : index
    %4 = vector.load %arg2[%c0_2, %c0_3, %c0_4] : memref<2x2x128xf32, #tpu.memory_space<vmem>>, vector<2x2x128xf32>
    %cst = arith.constant dense<0.000000e+00> : vector<2x128xf32>
    %5 = vector.multi_reduction <add>, %4, %cst [1] : vector<2x2x128xf32> to vector<2x128xf32>
    %6 = arith.addf %3, %5 : vector<2x128xf32>
    %c0_5 = arith.constant 0 : index
    %c0_6 = arith.constant 0 : index
    %7 = vector.load %arg6[%c0_5, %c0_6] : memref<2x128xf32, #tpu.memory_space<vmem>>, vector<2x128xf32>
    tpu.vector_store %arg6[%c0_5, %c0_6], %6 {strides = array<i32>} : memref<2x128xf32, #tpu.memory_space<vmem>>, vector<2x128xf32>,
    %c0_i32_7 = arith.constant 0 : i32
    %8 = arith.cmpi eq, %arg1, %c0_i32_7 : i32
    %9 = arith.extui %8 : i1 to i32
    %c0_i32_8 = arith.constant 0 : i32
    %10 = arith.cmpi ne, %9, %c0_i32_8 : i32
    scf.if %10 {
      %c0_9 = arith.constant 0 : index
      %c0_10 = arith.constant 0 : index
      %11 = vector.load %arg6[%c0_9, %c0_10] : memref<2x128xf32, #tpu.memory_space<vmem>>, vector<2x128xf32>
      %cst_11 = arith.constant 1.250000e-01 : f32
      %12 = vector.broadcast %cst_11 : f32 to vector<2x128xf32>
      %13 = arith.mulf %11, %12 : vector<2x128xf32>
      %c0_12 = arith.constant 0 : index
      %c0_13 = arith.constant 0 : index
      %14 = vector.load %arg3[%c0_12, %c0_13] : memref<128x128xf32, #tpu.memory_space<vmem>>, vector<128x128xf32>
      %cst_14 = arith.constant dense<0.000000e+00> : vector<2x128xf32>
      %15 = tpu.matmul %13, %14, %cst_14 {dimension_numbers = #tpu.dot_dimension_numbers<[1], [0], [0], [1], [0, 0, 1, 1], [], []>} : vector<2x128xf32>, vector<128x128xf32>, vector<2x128xf32> -> vector<2x128xf32>
      %c0_15 = arith.constant 0 : index
      %c0_16 = arith.constant 0 : index
      %16 = vector.load %arg4[%c0_15, %c0_16] : memref<1x128xf32, #tpu.memory_space<vmem>>, vector<1x128xf32>
      %17 = vector.broadcast %16 : vector<1x128xf32> to vector<2x128xf32>
      %18 = arith.addf %15, %17 : vector<2x128xf32>
      %19 = math.tanh %18 : vector<2x128xf32>
      %c0_17 = arith.constant 0 : index
      %c0_18 = arith.constant 0 : index
      %20 = vector.load %arg5[%c0_17, %c0_18] : memref<2x128xf32, #tpu.memory_space<vmem>>, vector<2x128xf32>
      tpu.vector_store %arg5[%c0_17, %c0_18], %19 {strides = array<i32>} : memref<2x128xf32, #tpu.memory_space<vmem>>, vector<2x128xf32>,
    } else {
    }
    return
  }
  func.func @transform_0(%arg0: i32, %arg1: i32) -> (i32, i32, i32) {
    %c0_i32 = arith.constant 0 : i32
    %c0_i32_0 = arith.constant 0 : i32
    return %arg0, %arg1, %c0_i32 : i32, i32, i32
  }
  func.func @transform_1(%arg0: i32, %arg1: i32) -> (i32, i32) {
    %c0_i32 = arith.constant 0 : i32
    %c0_i32_0 = arith.constant 0 : i32
    %c0_i32_1 = arith.constant 0 : i32
    return %c0_i32, %c0_i32_0 : i32, i32
  }
  func.func @transform_2(%arg0: i32, %arg1: i32) -> (i32, i32) {
    %c0_i32 = arith.constant 0 : i32
    %c0_i32_0 = arith.constant 0 : i32
    %c0_i32_1 = arith.constant 0 : i32
    return %c0_i32, %c0_i32_0 : i32, i32
  }
  func.func @transform_3(%arg0: i32, %arg1: i32) -> (i32, i32) {
    %c0_i32 = arith.constant 0 : i32
    %c0_i32_0 = arith.constant 0 : i32
    return %arg0, %c0_i32 : i32, i32
  }
}

module attributes {stable_mosaic.version = 11 : i64} {
  func.func @_decoder_init_kernel(%arg0: i32, %arg1: i32, %arg2: memref<2x2x128xf32, #tpu.memory_space<vmem>>, %arg3: memref<128x128xf32, #tpu.memory_space<vmem>>, %arg4: memref<1x128xf32, #tpu.memory_space<vmem>>, %arg5: memref<2x128xf32, #tpu.memory_space<vmem>>, %arg6: memref<2x128xf32, #tpu.memory_space<vmem>>) attributes {dimension_semantics = [#tpu.dimension_semantics<parallel>, #tpu.dimension_semantics<arbitrary>], iteration_bounds = array<i64: 1, 1>, scalar_prefetch = 0 : i64, scratch_operands = 1 : i64, tpu.core_type = #tpu.core_type<tc>, window_params = [{transform_indices = @transform_0, window_bounds = array<i64: 2, 2, 128>}, {pipeline_mode = #tpu.pipeline_mode<synchronous>, transform_indices = @transform_1, window_bounds = array<i64: 128, 128>}, {pipeline_mode = #tpu.pipeline_mode<synchronous>, transform_indices = @transform_2, window_bounds = array<i64: 1, 128>}, {transform_indices = @transform_3, window_bounds = array<i64: 2, 128>}]} {
    %c0_i32 = arith.constant 0 : i32
    %0 = arith.cmpi eq, %arg1, %c0_i32 : i32
    %1 = arith.extui %0 : i1 to i32
    %c0_i32_0 = arith.constant 0 : i32
    %2 = arith.cmpi ne, %1, %c0_i32_0 : i32
    scf.if %2 {
      %cst_9 = arith.constant 0.000000e+00 : f32
      %11 = vector.broadcast %cst_9 : f32 to vector<2x128xf32>
      %c0_10 = arith.constant 0 : index
      %c0_11 = arith.constant 0 : index
      %12 = vector.load %arg6[%c0_10, %c0_11] : memref<2x128xf32, #tpu.memory_space<vmem>>, vector<2x128xf32>
      tpu.vector_store %arg6[%c0_10, %c0_11], %11 {strides = array<i32>} : memref<2x128xf32, #tpu.memory_space<vmem>>, vector<2x128xf32>,
    } else {
    }
    %c0 = arith.constant 0 : index
    %c0_1 = arith.constant 0 : index
    %3 = vector.load %arg6[%c0, %c0_1] : memref<2x128xf32, #tpu.memory_space<vmem>>, vector<2x128xf32>
    %c0_2 = arith.constant 0 : index
    %c0_3 = arith.constant 0 : index
    %c0_4 = arith.constant 0 : index
    %4 = vector.load %arg2[%c0_2, %c0_3, %c0_4] : memref<2x2x128xf32, #tpu.memory_space<vmem>>, vector<2x2x128xf32>
    %cst = arith.constant dense<0.000000e+00> : vector<2x128xf32>
    %5 = vector.multi_reduction <add>, %4, %cst [1] : vector<2x2x128xf32> to vector<2x128xf32>
    %6 = arith.addf %3, %5 : vector<2x128xf32>
    %c0_5 = arith.constant 0 : index
    %c0_6 = arith.constant 0 : index
    %7 = vector.load %arg6[%c0_5, %c0_6] : memref<2x128xf32, #tpu.memory_space<vmem>>, vector<2x128xf32>
    tpu.vector_store %arg6[%c0_5, %c0_6], %6 {strides = array<i32>} : memref<2x128xf32, #tpu.memory_space<vmem>>, vector<2x128xf32>,
    %c0_i32_7 = arith.constant 0 : i32
    %8 = arith.cmpi eq, %arg1, %c0_i32_7 : i32
    %9 = arith.extui %8 : i1 to i32
    %c0_i32_8 = arith.constant 0 : i32
    %10 = arith.cmpi ne, %9, %c0_i32_8 : i32
    scf.if %10 {
      %c0_9 = arith.constant 0 : index
      %c0_10 = arith.constant 0 : index
      %11 = vector.load %arg6[%c0_9, %c0_10] : memref<2x128xf32, #tpu.memory_space<vmem>>, vector<2x128xf32>
      %cst_11 = arith.constant 1.250000e-01 : f32
      %12 = vector.broadcast %cst_11 : f32 to vector<2x128xf32>
      %13 = arith.mulf %11, %12 : vector<2x128xf32>
      %c0_12 = arith.constant 0 : index
      %c0_13 = arith.constant 0 : index
      %14 = vector.load %arg3[%c0_12, %c0_13] : memref<128x128xf32, #tpu.memory_space<vmem>>, vector<128x128xf32>
      %cst_14 = arith.constant dense<0.000000e+00> : vector<2x128xf32>
      %15 = tpu.matmul %13, %14, %cst_14 {dimension_numbers = #tpu.dot_dimension_numbers<[1], [0], [0], [1], [0, 0, 1, 1], [], []>} : vector<2x128xf32>, vector<128x128xf32>, vector<2x128xf32> -> vector<2x128xf32>
      %c0_15 = arith.constant 0 : index
      %c0_16 = arith.constant 0 : index
      %16 = vector.load %arg4[%c0_15, %c0_16] : memref<1x128xf32, #tpu.memory_space<vmem>>, vector<1x128xf32>
      %17 = vector.broadcast %16 : vector<1x128xf32> to vector<2x128xf32>
      %18 = arith.addf %15, %17 : vector<2x128xf32>
      %19 = math.tanh %18 : vector<2x128xf32>
      %c0_17 = arith.constant 0 : index
      %c0_18 = arith.constant 0 : index
      %20 = vector.load %arg5[%c0_17, %c0_18] : memref<2x128xf32, #tpu.memory_space<vmem>>, vector<2x128xf32>
      tpu.vector_store %arg5[%c0_17, %c0_18], %19 {strides = array<i32>} : memref<2x128xf32, #tpu.memory_space<vmem>>, vector<2x128xf32>,
    } else {
    }
    return
  }
  func.func @transform_0(%arg0: i32, %arg1: i32) -> (i32, i32, i32) {
    %c0_i32 = arith.constant 0 : i32
    %c0_i32_0 = arith.constant 0 : i32
    return %arg0, %arg1, %c0_i32 : i32, i32, i32
  }
  func.func @transform_1(%arg0: i32, %arg1: i32) -> (i32, i32) {
    %c0_i32 = arith.constant 0 : i32
    %c0_i32_0 = arith.constant 0 : i32
    %c0_i32_1 = arith.constant 0 : i32
    return %c0_i32, %c0_i32_0 : i32, i32
  }
  func.func @transform_2(%arg0: i32, %arg1: i32) -> (i32, i32) {
    %c0_i32 = arith.constant 0 : i32
    %c0_i32_0 = arith.constant 0 : i32
    %c0_i32_1 = arith.constant 0 : i32
    return %c0_i32, %c0_i32_0 : i32, i32
  }
  func.func @transform_3(%arg0: i32, %arg1: i32) -> (i32, i32) {
    %c0_i32 = arith.constant 0 : i32
    %c0_i32_0 = arith.constant 0 : i32
    return %arg0, %c0_i32 : i32, i32
  }
}

</mosaic_0001>

<bundles_post_ra>
// kernel: tpu_custom_call.1
= control target key start
LH: loop header
LB: loop body
LE: loop exit
PB: predicated region body
PF: predicated region fallthrough
CT: control target
= control target key end

     0   :  { %8 = vsyncpa [#allocation4], 0  ;;  %s378_s0 = inlined_call_operand.hbm [shape: f32[2,2,128], index: 0, kind: input, shape index: {}]   ;;  %s379_s1 = inlined_call_operand.hbm [shape: f32[128,128], index: 1, kind: input, shape index: {}]   ;;  %s380_s2 = inlined_call_operand.vmem [shape: f32[1,128], index: 2, kind: input, shape index: {}]   ;;  %s381_s3 = inlined_call_operand.hbm [shape: f32[2,128], index: 3, kind: output, shape index: {}]  }
   0x1   :  { %9 = vsyncpa [#allocation7], 0 }
   0x2   :  { %10 = vsyncpa [#allocation5], 0  ;;  %s319_s12 = smov [#allocation3]  }
   0x3   :  { %s16_s13 = sshll.u32 %s319_s12, 4  ;;  %s17_s13 = int_to_ptr.vmem [resolvable:$true] %s16_s13 }
   0x4   :  { %s261_s14 = scalar_lea.vmem %s17_s13, 64  ;;  %p266_p1 = scmp.lt.s32.totalorder %s17_s13, %s17_s13 }
   0x5   :  { %p262_p0 = scmp.ne.s32.totalorder %s17_s13, %s261_s14  ;;  %p267_p2 = scmp.lt.s32.totalorder %s261_s14, %s261_s14 }
   0x7   :  { %p268_p3 = por %p267_p2, %p266_p1 }
   0x9   :  { %p269_p4 = pnand %p268_p3, %p262_p0 }
   0xb   :  { %272 = shalt.err (!%p269_p4)
}
   0xc   :  { %s320_s15 = smov 32   ;;  %s321_s16 = smov 2  }
   0xd   :  { %22 = dma.hbm_to_vmem [thread:$0]  %s378_s0, 64, %s17_s13, [#allocation4], %s320_s15, %s320_s15, %s321_s16  }
   0xe   :  { %s322_s19 = smov [#allocation6]  }
   0xf   :  { %s28_s20 = sshll.u32 %s322_s19, 4  ;;  %s29_s20 = int_to_ptr.vmem [resolvable:$true] %s28_s20 }
  0x10   :  { %s281_s21 = scalar_lea.vmem %s29_s20, 2048  ;;  %p286_p6 = scmp.lt.s32.totalorder %s29_s20, %s29_s20 }
  0x11   :  { %p282_p5 = scmp.ne.s32.totalorder %s29_s20, %s281_s21  ;;  %p287_p7 = scmp.lt.s32.totalorder %s281_s21, %s281_s21 }
  0x13   :  { %p288_p8 = por %p287_p7, %p286_p6 }
  0x15   :  { %p289_p9 = pnand %p288_p8, %p282_p5 }
  0x17   :  { %292 = shalt.err (!%p289_p9)
}
  0x18   :  { %s323_s22 = smov 128   ;;  %s324_s23 = smov 8  }
  0x19   :  { %34 = dma.hbm_to_vmem [thread:$0]  %s379_s1, 2048, %s29_s20, [#allocation7], %s323_s22, %s323_s22, %s324_s23  }
  0x1a   :  { %313 = dma.done.wait [#allocation4], 64  }
  0x1b   :  { %314 = vsyncadd [#allocation4], 4294967232 }
  0x1c   :  { %315 = dma.done.wait [#allocation7], 2048  }
  0x1d   :  { %316 = vsyncadd [#allocation7], 4294965248  ;;  %v325_v0 = vmov 0.0   ;;  %vm326_vm0 = vmmov 0   ;;  %v93_v1 = vld [vmem:[#allocation6 + $0x78] sm:$0xff]  ;;  %v92_v2 = vld [vmem:[#allocation6 + $0x70] sm:$0xff] }
  0x1e   :  { %207 = vmatprep.subr.mxu0 %v325_v0  ;;  %47 = vst [vmem:[#allocation2] sm:$0x3] %v325_v0  ;;  %239 = vmatprep.mubr.msk.f32.mxu0 %vm326_vm0, %v325_v0  ;;  %v91_v3 = vld [vmem:[#allocation6 + $0x68] sm:$0xff]  ;;  %vm51_vm1 = vcmask 1041408   ;;  %v90_v4 = vld [vmem:[#allocation6 + $0x60] sm:$0xff]  ;;  %v89_v6 = vld [vmem:[#allocation6 + $0x58] sm:$0xff] }
  0x1f   :  { %208 = vmatpush3.msra.mxu0 %v93_v1  ;;  %v49_v5 = vld [vmem:[#allocation3] sm:$0x3]  ;;  %v50_v7 = vld [vmem:[#allocation3 + $0x2] sm:$0x3]  ;;  %v88_v11 = vld [vmem:[#allocation6 + $0x50] sm:$0xff]  ;;  %vm68_vm2 = vcmask 1041409  }
  0x20   :  { %209 = vmatprep.subr.mxu0 %v325_v0  ;;  %v52_v8 = vsel %vm51_vm1, %v49_v5, 0.0  ;;  %v59_v10 = vsel %vm51_vm1, %v50_v7, 0.0  ;;  %v87_v14 = vld [vmem:[#allocation6 + $0x48] sm:$0xff]  ;;  %v86_v17 = vld [vmem:[#allocation6 + $0x40] sm:$0xff]  ;;  %v85_v20 = vld [vmem:[#allocation6 + $0x38] sm:$0xff]  ;;  %s327_s26 = smov [#allocation8]  }
  0x21   :  { %210 = vmatpush3.msra.mxu0 %v92_v2  ;;  %v53_v9 = vrot.slane %v52_v8, 4  ;;  %v60_v12 = vrot.slane %v59_v10, 4  ;;  %v84_v23 = vld [vmem:[#allocation6 + $0x30] sm:$0xff]  ;;  %v83_v26 = vld [vmem:[#allocation6 + $0x28] sm:$0xff]  ;;  %v82_v29 = vld [vmem:[#allocation6 + $0x20] sm:$0xff]  ;;  %s179_s27 = sshll.u32 %s327_s26, 4  ;;  %s180_s27 = int_to_ptr.vmem [resolvable:$true] %s179_s27 }
  0x22   :  { %211 = vmatprep.subr.mxu0 %v325_v0  ;;  %v81_v32 = vld [vmem:[#allocation6 + $0x18] sm:$0xff]  ;;  %v80_v33 = vld [vmem:[#allocation6 + $0x10] sm:$0xff]  ;;  %v79_v34 = vld [vmem:[#allocation6 + $0x8] sm:$0xff]  ;;  %s293_s28 = scalar_lea.vmem %s180_s27, 32  ;;  %p298_p11 = scmp.lt.s32.totalorder %s180_s27, %s180_s27 }
  0x23   :  { %212 = vmatpush3.msra.mxu0 %v91_v3  ;;  %v54_v13 = vadd.f32 %v53_v9, %v52_v8  ;;  %v61_v15 = vadd.f32 %v60_v12, %v59_v10  ;;  %v78_v35 = vld [vmem:[#allocation6] sm:$0xff]  ;;  %v189_v38 = vld [vmem:[%s380_s2] ss:$0 sm:$0xff]  ;;  %p294_p10 = scmp.ne.s32.totalorder %s180_s27, %s293_s28  ;;  %p299_p12 = scmp.lt.s32.totalorder %s293_s28, %s293_s28 }
  0x24   :  { %213 = vmatprep.subr.mxu0 %v325_v0 }
  0x25   :  { %214 = vmatpush3.msra.mxu0 %v90_v4  ;;  %v55_v16 = vrot.slane %v54_v13, 2  ;;  %v62_v18 = vrot.slane %v61_v15, 2  ;;  %v48_v27 = vld [vmem:[#allocation2] sm:$0x3]  ;;  %p300_p13 = por %p299_p12, %p298_p11 }
  0x26   :  { %215 = vmatprep.subr.mxu0 %v325_v0 }
  0x27   :  { %216 = vmatpush3.msra.mxu0 %v89_v6  ;;  %v56_v19 = vadd.f32 %v55_v16, %v54_v13  ;;  %v63_v21 = vadd.f32 %v62_v18, %v61_v15  ;;  %p301_p0 = pnand %p300_p13, %p294_p10 }
  0x28   :  { %217 = vmatprep.subr.mxu0 %v325_v0 }
  0x29   :  { %218 = vmatpush3.msra.mxu0 %v88_v11  ;;  %v57_v22 = vrot.slane %v56_v19, 1  ;;  %v64_v24 = vrot.slane %v63_v21, 1 }
  0x2a   :  { %219 = vmatprep.subr.mxu0 %v325_v0 }
  0x2b   :  { %220 = vmatpush3.msra.mxu0 %v87_v14  ;;  %v58_v25 = vadd.f32 %v57_v22, %v56_v19  ;;  %v65_v28 = vadd.f32 %v64_v24, %v63_v21 }
  0x2c   :  { %221 = vmatprep.subr.mxu0 %v325_v0 }
  0x2d   :  { %222 = vmatpush3.msra.mxu0 %v86_v17  ;;  %v69_v30 = vsel %vm68_vm2, %v65_v28, %v58_v25 }
  0x2e   :  { %223 = vmatprep.subr.mxu0 %v325_v0  ;;  %v71_v31 = vadd.f32 %v69_v30, %v48_v27 }
  0x2f   :  { %224 = vmatpush3.msra.mxu0 %v85_v20 }
  0x30   :  { %225 = vmatprep.subr.mxu0 %v325_v0  ;;  %72 = vst [vmem:[#allocation2] sm:$0x3] %v71_v31 }
  0x31   :  { %226 = vmatpush3.msra.mxu0 %v84_v23 }
  0x32   :  { %227 = vmatprep.subr.mxu0 %v325_v0 }
  0x33   :  { %228 = vmatpush3.msra.mxu0 %v83_v26 }
  0x34   :  { %229 = vmatprep.subr.mxu0 %v325_v0 }
  0x35   :  { %230 = vmatpush3.msra.mxu0 %v82_v29 }
  0x36   :  { %231 = vmatprep.subr.mxu0 %v325_v0 }
  0x37   :  { %232 = vmatpush3.msra.mxu0 %v81_v32  ;;  %v76_v36 = vld [vmem:[#allocation2] sm:$0x3] }
  0x38   :  { %233 = vmatprep.subr.mxu0 %v325_v0  ;;  %v77_v37 = vmul.f32 0.125, %v76_v36 }
  0x39   :  { %234 = vmatpush3.msra.mxu0 %v80_v33 }
  0x3a   :  { %235 = vmatprep.subr.mxu0 %v325_v0 }
  0x3b   :  { %236 = vmatpush3.msra.mxu0 %v79_v34 }
  0x3c   :  { %237 = vmatprep.subr.mxu0 %v325_v0 }
  0x3d   :  { %238 = vmatpush3.msra.mxu0 %v78_v35 }
  0x3e   :  { %240 = vmatmul.mubr.f32.vlgmr.msra.gmra.mxu0 %v77_v37 }
  0xfe   :  { %v167_v39 = vpop.f32.mrf.mxu0 }
  0xff   :  { %v168_v40 = vadd.f32 %v189_v38, %v167_v39 }
 0x100   :  { %v241_v41 = vpop.f32.mrf.mxu0 }
 0x101   :  { %251 = vtanh.f32 %v168_v40 }
 0x10e   :  { %v252_v42 = vpop.eup %251 }
 0x10f   :  { %172 = vst [vmem:[#allocation8] sm:$0x3] %v252_v42 }
 0x110   :  { %304 = shalt.err (!%p301_p0)
}
 0x111   :  { %182 = dma.vmem_to_hbm [thread:$0]  %s180_s27, 32, %s381_s3, [#allocation5]  }
 0x112   :  { %317 = dma.done.wait [#allocation5], 32  }
 0x113   :  { %318 = vsyncadd [#allocation5], 4294967264 }
 0x114   :  { %186 = vsyncpa [#allocation4], 1 }
 0x115   :  { %187 = vsyncpa [#allocation7], 1 }
 0x116   :  { %188 = vsyncpa [#allocation5], 1 }

// kernel: tpu_custom_call.1
= control target key start
LH: loop header
LB: loop body
LE: loop exit
PB: predicated region body
PF: predicated region fallthrough
CT: control target
= control target key end

     0   :  { %8 = vsyncpa [#allocation4], 0  ;;  %s378_s0 = inlined_call_operand.hbm [shape: f32[2,2,128], index: 0, kind: input, shape index: {}]   ;;  %s379_s1 = inlined_call_operand.hbm [shape: f32[128,128], index: 1, kind: input, shape index: {}]   ;;  %s380_s2 = inlined_call_operand.vmem [shape: f32[1,128], index: 2, kind: input, shape index: {}]   ;;  %s381_s3 = inlined_call_operand.hbm [shape: f32[2,128], index: 3, kind: output, shape index: {}]  }
   0x1   :  { %9 = vsyncpa [#allocation7], 0 }
   0x2   :  { %10 = vsyncpa [#allocation5], 0  ;;  %s319_s12 = smov [#allocation3]  }
   0x3   :  { %s16_s13 = sshll.u32 %s319_s12, 4  ;;  %s17_s13 = int_to_ptr.vmem [resolvable:$true] %s16_s13 }
   0x4   :  { %s261_s14 = scalar_lea.vmem %s17_s13, 64  ;;  %p266_p1 = scmp.lt.s32.totalorder %s17_s13, %s17_s13 }
   0x5   :  { %p262_p0 = scmp.ne.s32.totalorder %s17_s13, %s261_s14  ;;  %p267_p2 = scmp.lt.s32.totalorder %s261_s14, %s261_s14 }
   0x7   :  { %p268_p3 = por %p267_p2, %p266_p1 }
   0x9   :  { %p269_p4 = pnand %p268_p3, %p262_p0 }
   0xb   :  { %272 = shalt.err (!%p269_p4)
}
   0xc   :  { %s320_s15 = smov 32   ;;  %s321_s16 = smov 2  }
   0xd   :  { %22 = dma.hbm_to_vmem [thread:$0]  %s378_s0, 64, %s17_s13, [#allocation4], %s320_s15, %s320_s15, %s321_s16  }
   0xe   :  { %s322_s19 = smov [#allocation6]  }
   0xf   :  { %s28_s20 = sshll.u32 %s322_s19, 4  ;;  %s29_s20 = int_to_ptr.vmem [resolvable:$true] %s28_s20 }
  0x10   :  { %s281_s21 = scalar_lea.vmem %s29_s20, 2048  ;;  %p286_p6 = scmp.lt.s32.totalorder %s29_s20, %s29_s20 }
  0x11   :  { %p282_p5 = scmp.ne.s32.totalorder %s29_s20, %s281_s21  ;;  %p287_p7 = scmp.lt.s32.totalorder %s281_s21, %s281_s21 }
  0x13   :  { %p288_p8 = por %p287_p7, %p286_p6 }
  0x15   :  { %p289_p9 = pnand %p288_p8, %p282_p5 }
  0x17   :  { %292 = shalt.err (!%p289_p9)
}
  0x18   :  { %s323_s22 = smov 128   ;;  %s324_s23 = smov 8  }
  0x19   :  { %34 = dma.hbm_to_vmem [thread:$0]  %s379_s1, 2048, %s29_s20, [#allocation7], %s323_s22, %s323_s22, %s324_s23  }
  0x1a   :  { %313 = dma.done.wait [#allocation4], 64  }
  0x1b   :  { %314 = vsyncadd [#allocation4], 4294967232 }
  0x1c   :  { %315 = dma.done.wait [#allocation7], 2048  }
  0x1d   :  { %316 = vsyncadd [#allocation7], 4294965248  ;;  %v325_v0 = vmov 0.0   ;;  %vm326_vm0 = vmmov 0   ;;  %v93_v1 = vld [vmem:[#allocation6 + $0x78] sm:$0xff]  ;;  %v92_v2 = vld [vmem:[#allocation6 + $0x70] sm:$0xff] }
  0x1e   :  { %207 = vmatprep.subr.mxu0 %v325_v0  ;;  %47 = vst [vmem:[#allocation2] sm:$0x3] %v325_v0  ;;  %239 = vmatprep.mubr.msk.f32.mxu0 %vm326_vm0, %v325_v0  ;;  %v91_v3 = vld [vmem:[#allocation6 + $0x68] sm:$0xff]  ;;  %vm51_vm1 = vcmask 1041408   ;;  %v90_v4 = vld [vmem:[#allocation6 + $0x60] sm:$0xff]  ;;  %v89_v6 = vld [vmem:[#allocation6 + $0x58] sm:$0xff] }
  0x1f   :  { %208 = vmatpush3.msra.mxu0 %v93_v1  ;;  %v49_v5 = vld [vmem:[#allocation3] sm:$0x3]  ;;  %v50_v7 = vld [vmem:[#allocation3 + $0x2] sm:$0x3]  ;;  %v88_v11 = vld [vmem:[#allocation6 + $0x50] sm:$0xff]  ;;  %vm68_vm2 = vcmask 1041409  }
  0x20   :  { %209 = vmatprep.subr.mxu0 %v325_v0  ;;  %v52_v8 = vsel %vm51_vm1, %v49_v5, 0.0  ;;  %v59_v10 = vsel %vm51_vm1, %v50_v7, 0.0  ;;  %v87_v14 = vld [vmem:[#allocation6 + $0x48] sm:$0xff]  ;;  %v86_v17 = vld [vmem:[#allocation6 + $0x40] sm:$0xff]  ;;  %v85_v20 = vld [vmem:[#allocation6 + $0x38] sm:$0xff]  ;;  %s327_s26 = smov [#allocation8]  }
  0x21   :  { %210 = vmatpush3.msra.mxu0 %v92_v2  ;;  %v53_v9 = vrot.slane %v52_v8, 4  ;;  %v60_v12 = vrot.slane %v59_v10, 4  ;;  %v84_v23 = vld [vmem:[#allocation6 + $0x30] sm:$0xff]  ;;  %v83_v26 = vld [vmem:[#allocation6 + $0x28] sm:$0xff]  ;;  %v82_v29 = vld [vmem:[#allocation6 + $0x20] sm:$0xff]  ;;  %s179_s27 = sshll.u32 %s327_s26, 4  ;;  %s180_s27 = int_to_ptr.vmem [resolvable:$true] %s179_s27 }
  0x22   :  { %211 = vmatprep.subr.mxu0 %v325_v0  ;;  %v81_v32 = vld [vmem:[#allocation6 + $0x18] sm:$0xff]  ;;  %v80_v33 = vld [vmem:[#allocation6 + $0x10] sm:$0xff]  ;;  %v79_v34 = vld [vmem:[#allocation6 + $0x8] sm:$0xff]  ;;  %s293_s28 = scalar_lea.vmem %s180_s27, 32  ;;  %p298_p11 = scmp.lt.s32.totalorder %s180_s27, %s180_s27 }
  0x23   :  { %212 = vmatpush3.msra.mxu0 %v91_v3  ;;  %v54_v13 = vadd.f32 %v53_v9, %v52_v8  ;;  %v61_v15 = vadd.f32 %v60_v12, %v59_v10  ;;  %v78_v35 = vld [vmem:[#allocation6] sm:$0xff]  ;;  %v189_v38 = vld [vmem:[%s380_s2] ss:$0 sm:$0xff]  ;;  %p294_p10 = scmp.ne.s32.totalorder %s180_s27, %s293_s28  ;;  %p299_p12 = scmp.lt.s32.totalorder %s293_s28, %s293_s28 }
  0x24   :  { %213 = vmatprep.subr.mxu0 %v325_v0 }
  0x25   :  { %214 = vmatpush3.msra.mxu0 %v90_v4  ;;  %v55_v16 = vrot.slane %v54_v13, 2  ;;  %v62_v18 = vrot.slane %v61_v15, 2  ;;  %v48_v27 = vld [vmem:[#allocation2] sm:$0x3]  ;;  %p300_p13 = por %p299_p12, %p298_p11 }
  0x26   :  { %215 = vmatprep.subr.mxu0 %v325_v0 }
  0x27   :  { %216 = vmatpush3.msra.mxu0 %v89_v6  ;;  %v56_v19 = vadd.f32 %v55_v16, %v54_v13  ;;  %v63_v21 = vadd.f32 %v62_v18, %v61_v15  ;;  %p301_p0 = pnand %p300_p13, %p294_p10 }
  0x28   :  { %217 = vmatprep.subr.mxu0 %v325_v0 }
  0x29   :  { %218 = vmatpush3.msra.mxu0 %v88_v11  ;;  %v57_v22 = vrot.slane %v56_v19, 1  ;;  %v64_v24 = vrot.slane %v63_v21, 1 }
  0x2a   :  { %219 = vmatprep.subr.mxu0 %v325_v0 }
  0x2b   :  { %220 = vmatpush3.msra.mxu0 %v87_v14  ;;  %v58_v25 = vadd.f32 %v57_v22, %v56_v19  ;;  %v65_v28 = vadd.f32 %v64_v24, %v63_v21 }
  0x2c   :  { %221 = vmatprep.subr.mxu0 %v325_v0 }
  0x2d   :  { %222 = vmatpush3.msra.mxu0 %v86_v17  ;;  %v69_v30 = vsel %vm68_vm2, %v65_v28, %v58_v25 }
  0x2e   :  { %223 = vmatprep.subr.mxu0 %v325_v0  ;;  %v71_v31 = vadd.f32 %v69_v30, %v48_v27 }
  0x2f   :  { %224 = vmatpush3.msra.mxu0 %v85_v20 }
  0x30   :  { %225 = vmatprep.subr.mxu0 %v325_v0  ;;  %72 = vst [vmem:[#allocation2] sm:$0x3] %v71_v31 }
  0x31   :  { %226 = vmatpush3.msra.mxu0 %v84_v23 }
  0x32   :  { %227 = vmatprep.subr.mxu0 %v325_v0 }
  0x33   :  { %228 = vmatpush3.msra.mxu0 %v83_v26 }
  0x34   :  { %229 = vmatprep.subr.mxu0 %v325_v0 }
  0x35   :  { %230 = vmatpush3.msra.mxu0 %v82_v29 }
  0x36   :  { %231 = vmatprep.subr.mxu0 %v325_v0 }
  0x37   :  { %232 = vmatpush3.msra.mxu0 %v81_v32  ;;  %v76_v36 = vld [vmem:[#allocation2] sm:$0x3] }
  0x38   :  { %233 = vmatprep.subr.mxu0 %v325_v0  ;;  %v77_v37 = vmul.f32 0.125, %v76_v36 }
  0x39   :  { %234 = vmatpush3.msra.mxu0 %v80_v33 }
  0x3a   :  { %235 = vmatprep.subr.mxu0 %v325_v0 }
  0x3b   :  { %236 = vmatpush3.msra.mxu0 %v79_v34 }
  0x3c   :  { %237 = vmatprep.subr.mxu0 %v325_v0 }
  0x3d   :  { %238 = vmatpush3.msra.mxu0 %v78_v35 }
  0x3e   :  { %240 = vmatmul.mubr.f32.vlgmr.msra.gmra.mxu0 %v77_v37 }
  0xfe   :  { %v167_v39 = vpop.f32.mrf.mxu0 }
  0xff   :  { %v168_v40 = vadd.f32 %v189_v38, %v167_v39 }
 0x100   :  { %v241_v41 = vpop.f32.mrf.mxu0 }
 0x101   :  { %251 = vtanh.f32 %v168_v40 }
 0x10e   :  { %v252_v42 = vpop.eup %251 }
 0x10f   :  { %172 = vst [vmem:[#allocation8] sm:$0x3] %v252_v42 }
 0x110   :  { %304 = shalt.err (!%p301_p0)
}
 0x111   :  { %182 = dma.vmem_to_hbm [thread:$0]  %s180_s27, 32, %s381_s3, [#allocation5]  }
 0x112   :  { %317 = dma.done.wait [#allocation5], 32  }
 0x113   :  { %318 = vsyncadd [#allocation5], 4294967264 }
 0x114   :  { %186 = vsyncpa [#allocation4], 1 }
 0x115   :  { %187 = vsyncpa [#allocation7], 1 }
 0x116   :  { %188 = vsyncpa [#allocation5], 1 }

</bundles_post_ra>
